<compile_context>
chip_gen: v7x
topology: tpu7x:2x2x1
jax: 0.10.0
libtpu: 0.0.40
codegen_flags: <defaults>
</compile_context>

<pallas_src>
import itertools
import random

import jax
import jax.numpy as jnp
from jax.experimental import pallas as pl
from jax.experimental.pallas import tpu as pltpu

EPS = 1e-8
_INV_SQRT2 = 0.7071067811865476

# Eigen / XLA float32 erf: erf(x) = clamp(x,-4,4) * P(x^2) / Q(x^2).
# Coefficients are highest-degree-first (Horner).
_ERF_ALPHA = (-2.72614225801306e-10, 2.77068142495902e-08, -2.10102402082508e-06,
              -5.69250639462346e-05, -7.34990630326855e-04, -2.95459980854025e-03,
              -1.60960333262415e-02)
_ERF_BETA = (-1.45660718464996e-05, -2.13374055278905e-04, -1.68282697438203e-03,
             -7.37332916720468e-03, -1.42647390514189e-02)


def _round_up(x, m):
    return -(-x // m) * m


# ----------------------------- kernel-side math ------------------------------

def _erf_in_kernel(x):
    """f32-accurate rational erf; divide replaced by approx vrcp + 1 Newton step."""
    x = jnp.clip(x, -4.0, 4.0)
    x2 = x * x
    num = _ERF_ALPHA[0]
    for c in _ERF_ALPHA[1:]:
        num = num * x2 + c
    num = num * x                       # odd polynomial: x * P(x^2)
    den = _ERF_BETA[0]
    for c in _ERF_BETA[1:]:
        den = den * x2 + c
    inv = pl.reciprocal(den, approx=True)      # EUP slot
    inv = inv * (2.0 - den * inv)              # Newton step -> ~f32-exact 1/den
    return num * inv


def _tile_loss(pm_i, pm_j, gm_i, gm_j, gs_i, gs_j, inv_p_std):
    # pm_i/gm_i/gs_i: (ti, 1) columns, pm_j/gm_j/gs_j: (1, tj) rows.
    # u = erf(.) = 2p-1, v = 2g-1; the 0.5*(1+erf) affines are folded into the
    # sqrt arguments: sqrt(p*g+eps) = 0.5*sqrt((1+u)(1+v)+4*eps), etc.
    u = _erf_in_kernel((pm_i - pm_j) * inv_p_std)
    g_var = gs_i * gs_i + gs_i * gs_j + EPS
    v = _erf_in_kernel((gm_i - gm_j) * jax.lax.rsqrt(g_var))
    return 1.0 - 0.5 * (jnp.sqrt((1.0 + u) * (1.0 + v) + 4.0 * EPS)
                        + jnp.sqrt((1.0 - u) * (1.0 - v) + 4.0 * EPS))


def _emit(out_ref, compute_fn):
    ti, tj = out_ref.shape[1], out_ref.shape[2]
    i = pl.program_id(1)
    j = pl.program_id(2)
    # Tile entirely in the strict lower triangle (row > col everywhere):
    # its entries are never gathered, so skip the math and just write zeros.
    below_diag = i * ti >= (j + 1) * tj

    @pl.when(jnp.logical_not(below_diag))
    def _():
        out_ref[0] = compute_fn()

    @pl.when(below_diag)
    def _():
        out_ref[...] = jnp.zeros_like(out_ref)


def _kernel_no_pstd(pm_c, pm_r, gm_c, gm_r, gs_c, gs_r, out_ref):
    _emit(out_ref,
          lambda: _tile_loss(pm_c[0], pm_r[0], gm_c[0], gm_r[0],
                             gs_c[0], gs_r[0], _INV_SQRT2))


def _kernel_with_pstd(pm_c, pm_r, gm_c, gm_r, gs_c, gs_r, ps_c, ps_r, out_ref):
    def compute():
        p_var = ps_c[0] * ps_c[0] + ps_c[0] * ps_r[0] + EPS
        return _tile_loss(pm_c[0], pm_r[0], gm_c[0], gm_r[0],
                          gs_c[0], gs_r[0], jax.lax.rsqrt(p_var))
    _emit(out_ref, compute)


# --------------------------------- wrapper ------------------------------------

def pairwise_fidelity_loss(pmos, gmos, gstd, pstd=None, ratio=1.0,
                           tile_i=256, tile_j=256, return_list=False):
    """Pairwise fidelity loss.

    Returns a (P, F, 1) array (pair-major, matching the order the PyTorch module
    appends loss items); `return_list=True` returns the original list of (F, 1)
    arrays instead.
    """
    B = int(pmos.shape[0])
    pairs = list(itertools.combinations(range(B), 2))
    if ratio < 1.0:
        # Host-side random subsampling, mirroring `random.sample` in the
        # reference (non-deterministic / non-jittable by design).
        pairs = random.sample(pairs, int(ratio * len(pairs)))
    P = len(pairs)
    idx_i = jnp.asarray([p[0] for p in pairs], dtype=jnp.int32)
    idx_j = jnp.asarray([p[1] for p in pairs], dtype=jnp.int32)

    def as_table(x):
        return jnp.asarray(x, jnp.float32).reshape(B, -1).T          # (F, B)

    pm, gm, gs = as_table(pmos), as_table(gmos), as_table(gstd)
    F = pm.shape[0]

    # Tile sizes: sublane axis multiple of 8, lane axis multiple of 128.
    ti = min(_round_up(max(int(tile_i), 8), 8), _round_up(B, 8))
    tj = min(_round_up(max(int(tile_j), 128), 128), _round_up(B, 128))
    bi = _round_up(B, ti)        # padded row (idx1, sublane) extent
    bj = _round_up(B, tj)        # padded col (idx2, lane) extent

    def col(x, pad):             # (F, bi, 1): sample index along sublanes
        return jnp.pad(x, ((0, 0), (0, bi - B)), constant_values=pad)[:, :, None]

    def row(x, pad):             # (F, 1, bj): sample index along lanes
        return jnp.pad(x, ((0, 0), (0, bj - B)), constant_values=pad)[:, None, :]

    # Pad values keep the padded region finite (never gathered).
    args = [col(pm, 0.0), row(pm, 0.0),
            col(gm, 0.0), row(gm, 0.0),
            col(gs, 1.0), row(gs, 1.0)]
    if pstd is None:
        kernel = _kernel_no_pstd
    else:
        ps = as_table(pstd)
        args += [col(ps, 1.0), row(ps, 1.0)]
        kernel = _kernel_with_pstd

    col_spec = pl.BlockSpec((1, ti, 1), lambda f, i, j: (f, i, 0))
    row_spec = pl.BlockSpec((1, 1, tj), lambda f, i, j: (f, 0, j))
    in_specs = [col_spec, row_spec] * (len(args) // 2)

    loss_mat = pl.pallas_call(
        kernel,
        out_shape=jax.ShapeDtypeStruct((F, bi, bj), jnp.float32),
        grid=(F, bi // ti, bj // tj),
        in_specs=in_specs,
        out_specs=pl.BlockSpec((1, ti, tj), lambda f, i, j: (f, i, j)),
        compiler_params=pltpu.CompilerParams(
            dimension_semantics=("parallel", "parallel", "parallel")),
    )(*args)

    # Tiny XLA gather back to combinations(range(B), 2) order (row < col).
    loss = loss_mat[:, idx_i, idx_j]            # (F, P)
    loss = loss.T.reshape(P, F, 1)
    if return_list:
        # Original PyTorch-style output: Python list of (F, 1) tensors.
        return [loss[k] for k in range(P)]
    return loss


# ----------------------------- references (pure JAX) -------------------------

def _reference_loop(pmos, gmos, gstd, pstd=None):
    """Literal per-pair loop, mirroring the PyTorch module."""
    from jax.scipy.special import erf
    B = pmos.shape[0]
    losses = []
    pm = jnp.asarray(pmos, jnp.float32).reshape(B, -1)
    gm = jnp.asarray(gmos, jnp.float32).reshape(B, -1)
    gs = jnp.asarray(gstd, jnp.float32).reshape(B, -1)
    ps = None if pstd is None else jnp.asarray(pstd, jnp.float32).reshape(B, -1)
    for i, j in itertools.combinations(range(B), 2):
        if ps is None:
            p = 0.5 * (1.0 + erf((pm[i] - pm[j]) / jnp.sqrt(2.0)))
        else:
            p_var = ps[i] * ps[i] + ps[i] * ps[j] + EPS
            p = 0.5 * (1.0 + erf((pm[i] - pm[j]) / jnp.sqrt(p_var)))
        g_var = gs[i] * gs[i] + gs[i] * gs[j] + EPS
        g = 0.5 * (1.0 + erf((gm[i] - gm[j]) / jnp.sqrt(g_var)))
        p = p.reshape(-1, 1)
        g = g.reshape(-1, 1)
        losses.append(1.0 - (jnp.sqrt(p * g + EPS) +
                             jnp.sqrt((1.0 - p) * (1.0 - g) + EPS)))
    return losses


def _reference_vec(pmos, gmos, gstd, pstd=None):
    """Vectorized reference; returns (P, F)."""
    from jax.scipy.special import erf
    B = pmos.shape[0]
    pairs = list(itertools.combinations(range(B), 2))
    i1 = jnp.asarray([a for a, _ in pairs], jnp.int32)
    i2 = jnp.asarray([b for _, b in pairs], jnp.int32)
    pm = jnp.asarray(pmos, jnp.float32).reshape(B, -1)
    gm = jnp.asarray(gmos, jnp.float32).reshape(B, -1)
    gs = jnp.asarray(gstd, jnp.float32).reshape(B, -1)
    if pstd is None:
        p = 0.5 * (1.0 + erf((pm[i1] - pm[i2]) / jnp.sqrt(2.0)))
    else:
        ps = jnp.asarray(pstd, jnp.float32).reshape(B, -1)
        pv = ps[i1] * ps[i1] + ps[i1] * ps[i2] + EPS
        p = 0.5 * (1.0 + erf((pm[i1] - pm[i2]) / jnp.sqrt(pv)))
    gv = gs[i1] * gs[i1] + gs[i1] * gs[i2] + EPS
    g = 0.5 * (1.0 + erf((gm[i1] - gm[i2]) / jnp.sqrt(gv)))
    return 1.0 - (jnp.sqrt(p * g + EPS) + jnp.sqrt((1.0 - p) * (1.0 - g) + EPS))


if __name__ == "__main__":
    # The fidelity loss is ill-conditioned in f32 when p or g saturates (the
    # sqrt(eps) floor amplifies erf rounding by up to ~5e3), so the test inputs
    # are kept in a well-conditioned regime (moderate MOS differences, stds
    # around 1) and compared at atol=2e-5.
    key = jax.random.PRNGKey(0)
    ks = jax.random.split(key, 7)
    ATOL = 2e-5

    # --- Case 1 & 2: small batch (B=8 -> 28 pairs), both pstd branches. ------
    B = 8
    pmos = 0.25 * jax.random.normal(ks[0], (B,), dtype=jnp.float32)
    gmos = 0.25 * jax.random.normal(ks[1], (B,), dtype=jnp.float32)
    gstd = 0.8 + 0.4 * jnp.abs(jax.random.normal(ks[2], (B,), dtype=jnp.float32))
    pstd = 0.8 + 0.4 * jnp.abs(jax.random.normal(ks[3], (B,), dtype=jnp.float32))

    loss = jax.block_until_ready(pairwise_fidelity_loss(pmos, gmos, gstd))
    ref = _reference_loop(pmos, gmos, gstd)
    assert loss.shape == (len(ref), 1, 1)
    for k, r in enumerate(ref):
        assert r.shape == (1, 1)
        assert jnp.allclose(loss[k], r, atol=ATOL), (k, loss[k], r)

    loss_p = jax.block_until_ready(
        pairwise_fidelity_loss(pmos, gmos, gstd, pstd=pstd))
    ref_p = _reference_loop(pmos, gmos, gstd, pstd=pstd)
    for k, r in enumerate(ref_p):
        assert jnp.allclose(loss_p[k], r, atol=ATOL), (k, loss_p[k], r)

    # PyTorch-compatible list output path.
    loss_list = pairwise_fidelity_loss(pmos, gmos, gstd, return_list=True)
    assert len(loss_list) == len(ref) and loss_list[0].shape == (1, 1)
    assert jnp.allclose(loss_list[0], ref[0], atol=ATOL)

    # --- Case 3: larger batch, small tiles -> multi-tile grid (1,5,2) that ----
    # --- also exercises the skipped below-diagonal tile path. ----------------
    Bl = 160                                    # 12720 pairs
    pmos_l = 0.25 * jax.random.normal(ks[4], (Bl,), dtype=jnp.float32)
    gmos_l = 0.25 * jax.random.normal(ks[5], (Bl,), dtype=jnp.float32)
    gstd_l = 0.8 + 0.4 * jnp.abs(jax.random.normal(ks[6], (Bl,), dtype=jnp.float32))

    loss_l = jax.block_until_ready(
        pairwise_fidelity_loss(pmos_l, gmos_l, gstd_l, tile_i=32, tile_j=128))
    ref_l = _reference_vec(pmos_l, gmos_l, gstd_l)
    assert loss_l.shape == (ref_l.shape[0], ref_l.shape[1], 1)
    assert jnp.allclose(loss_l[..., 0], ref_l, atol=ATOL)

    print("KERNEL_OK")
</pallas_src>

<mosaic_0001>
module attributes {stable_mosaic.version = 11 : i64} {
  func.func @_kernel_no_pstd(%arg0: i32, %arg1: i32, %arg2: i32, %arg3: memref<1x8x1xf32, #tpu.memory_space<vmem>>, %arg4: memref<1x1x128xf32, #tpu.memory_space<vmem>>, %arg5: memref<1x8x1xf32, #tpu.memory_space<vmem>>, %arg6: memref<1x1x128xf32, #tpu.memory_space<vmem>>, %arg7: memref<1x8x1xf32, #tpu.memory_space<vmem>>, %arg8: memref<1x1x128xf32, #tpu.memory_space<vmem>>, %arg9: memref<1x8x128xf32, #tpu.memory_space<vmem>>) attributes {dimension_semantics = [#tpu.dimension_semantics<parallel>, #tpu.dimension_semantics<parallel>, #tpu.dimension_semantics<parallel>], iteration_bounds = array<i64: 1, 1, 1>, scalar_prefetch = 0 : i64, scratch_operands = 0 : i64, tpu.core_type = #tpu.core_type<tc>, window_params = [{transform_indices = @transform_0, window_bounds = array<i64: 1, 8, 1>}, {transform_indices = @transform_1, window_bounds = array<i64: 1, 1, 128>}, {transform_indices = @transform_2, window_bounds = array<i64: 1, 8, 1>}, {transform_indices = @transform_3, window_bounds = array<i64: 1, 1, 128>}, {transform_indices = @transform_4, window_bounds = array<i64: 1, 8, 1>}, {transform_indices = @transform_5, window_bounds = array<i64: 1, 1, 128>}, {transform_indices = @transform_6, window_bounds = array<i64: 1, 8, 128>}]} {
    %c8_i32 = arith.constant 8 : i32
    %0 = arith.muli %arg1, %c8_i32 : i32
    %c1_i32 = arith.constant 1 : i32
    %1 = arith.addi %arg2, %c1_i32 : i32
    %c128_i32 = arith.constant 128 : i32
    %2 = arith.muli %1, %c128_i32 : i32
    %3 = arith.cmpi sge, %0, %2 : i32
    %true = arith.constant true
    %4 = arith.xori %3, %true : i1
    %5 = arith.extui %4 : i1 to i32
    %c0_i32 = arith.constant 0 : i32
    %6 = arith.cmpi ne, %5, %c0_i32 : i32
    scf.if %6 {
      %c0 = arith.constant 0 : index
      %c0_1 = arith.constant 0 : index
      %c0_2 = arith.constant 0 : index
      %9 = vector.load %arg3[%c0, %c0_1, %c0_2] : memref<1x8x1xf32, #tpu.memory_space<vmem>>, vector<1x8x1xf32>
      %10 = vector.shape_cast %9 : vector<1x8x1xf32> to vector<8x1xf32>
      %c0_3 = arith.constant 0 : index
      %c0_4 = arith.constant 0 : index
      %c0_5 = arith.constant 0 : index
      %11 = vector.load %arg4[%c0_3, %c0_4, %c0_5] : memref<1x1x128xf32, #tpu.memory_space<vmem>>, vector<1x1x128xf32>
      %12 = vector.shape_cast %11 : vector<1x1x128xf32> to vector<1x128xf32>
      %c0_6 = arith.constant 0 : index
      %c0_7 = arith.constant 0 : index
      %c0_8 = arith.constant 0 : index
      %13 = vector.load %arg5[%c0_6, %c0_7, %c0_8] : memref<1x8x1xf32, #tpu.memory_space<vmem>>, vector<1x8x1xf32>
      %14 = vector.shape_cast %13 : vector<1x8x1xf32> to vector<8x1xf32>
      %c0_9 = arith.constant 0 : index
      %c0_10 = arith.constant 0 : index
      %c0_11 = arith.constant 0 : index
      %15 = vector.load %arg6[%c0_9, %c0_10, %c0_11] : memref<1x1x128xf32, #tpu.memory_space<vmem>>, vector<1x1x128xf32>
      %16 = vector.shape_cast %15 : vector<1x1x128xf32> to vector<1x128xf32>
      %c0_12 = arith.constant 0 : index
      %c0_13 = arith.constant 0 : index
      %c0_14 = arith.constant 0 : index
      %17 = vector.load %arg7[%c0_12, %c0_13, %c0_14] : memref<1x8x1xf32, #tpu.memory_space<vmem>>, vector<1x8x1xf32>
      %18 = vector.shape_cast %17 : vector<1x8x1xf32> to vector<8x1xf32>
      %c0_15 = arith.constant 0 : index
      %c0_16 = arith.constant 0 : index
      %c0_17 = arith.constant 0 : index
      %19 = vector.load %arg8[%c0_15, %c0_16, %c0_17] : memref<1x1x128xf32, #tpu.memory_space<vmem>>, vector<1x1x128xf32>
      %20 = vector.shape_cast %19 : vector<1x1x128xf32> to vector<1x128xf32>
      %21 = vector.broadcast %10 : vector<8x1xf32> to vector<8x128xf32>
      %22 = vector.broadcast %12 : vector<1x128xf32> to vector<8x128xf32>
      %23 = arith.subf %21, %22 : vector<8x128xf32>
      %cst = arith.constant 0.707106769 : f32
      %24 = vector.broadcast %cst : f32 to vector<8x128xf32>
      %25 = arith.mulf %23, %24 : vector<8x128xf32>
      %cst_18 = arith.constant -4.000000e+00 : f32
      %cst_19 = arith.constant 4.000000e+00 : f32
      %26 = vector.broadcast %cst_18 : f32 to vector<8x128xf32>
      %27 = arith.maximumf %26, %25 : vector<8x128xf32>
      %28 = vector.broadcast %cst_19 : f32 to vector<8x128xf32>
      %29 = arith.minimumf %28, %27 : vector<8x128xf32>
      %30 = arith.mulf %29, %29 : vector<8x128xf32>
      %cst_20 = arith.constant -2.72614237E-10 : f32
      %31 = vector.broadcast %cst_20 : f32 to vector<8x128xf32>
      %32 = arith.mulf %31, %30 : vector<8x128xf32>
      %cst_21 = arith.constant 2.77068146E-8 : f32
      %33 = vector.broadcast %cst_21 : f32 to vector<8x128xf32>
      %34 = arith.addf %32, %33 : vector<8x128xf32>
      %35 = arith.mulf %34, %30 : vector<8x128xf32>
      %cst_22 = arith.constant -2.10102394E-6 : f32
      %36 = vector.broadcast %cst_22 : f32 to vector<8x128xf32>
      %37 = arith.addf %35, %36 : vector<8x128xf32>
      %38 = arith.mulf %37, %30 : vector<8x128xf32>
      %cst_23 = arith.constant -5.69250624E-5 : f32
      %39 = vector.broadcast %cst_23 : f32 to vector<8x128xf32>
      %40 = arith.addf %38, %39 : vector<8x128xf32>
      %41 = arith.mulf %40, %30 : vector<8x128xf32>
      %cst_24 = arith.constant -7.34990637E-4 : f32
      %42 = vector.broadcast %cst_24 : f32 to vector<8x128xf32>
      %43 = arith.addf %41, %42 : vector<8x128xf32>
      %44 = arith.mulf %43, %30 : vector<8x128xf32>
      %cst_25 = arith.constant -2.954600e-03 : f32
      %45 = vector.broadcast %cst_25 : f32 to vector<8x128xf32>
      %46 = arith.addf %44, %45 : vector<8x128xf32>
      %47 = arith.mulf %46, %30 : vector<8x128xf32>
      %cst_26 = arith.constant -0.0160960332 : f32
      %48 = vector.broadcast %cst_26 : f32 to vector<8x128xf32>
      %49 = arith.addf %47, %48 : vector<8x128xf32>
      %50 = arith.mulf %49, %29 : vector<8x128xf32>
      %cst_27 = arith.constant -1.45660715E-5 : f32
      %51 = vector.broadcast %cst_27 : f32 to vector<8x128xf32>
      %52 = arith.mulf %51, %30 : vector<8x128xf32>
      %cst_28 = arith.constant -2.13374049E-4 : f32
      %53 = vector.broadcast %cst_28 : f32 to vector<8x128xf32>
      %54 = arith.addf %52, %53 : vector<8x128xf32>
      %55 = arith.mulf %54, %30 : vector<8x128xf32>
      %cst_29 = arith.constant -0.00168282702 : f32
      %56 = vector.broadcast %cst_29 : f32 to vector<8x128xf32>
      %57 = arith.addf %55, %56 : vector<8x128xf32>
      %58 = arith.mulf %57, %30 : vector<8x128xf32>
      %cst_30 = arith.constant -0.00737332925 : f32
      %59 = vector.broadcast %cst_30 : f32 to vector<8x128xf32>
      %60 = arith.addf %58, %59 : vector<8x128xf32>
      %61 = arith.mulf %60, %30 : vector<8x128xf32>
      %cst_31 = arith.constant -0.0142647391 : f32
      %62 = vector.broadcast %cst_31 : f32 to vector<8x128xf32>
      %63 = arith.addf %61, %62 : vector<8x128xf32>
      %64 = tpu.reciprocal %63 {approx = true} : vector<8x128xf32> -> vector<8x128xf32>
      %65 = arith.mulf %63, %64 : vector<8x128xf32>
      %cst_32 = arith.constant 2.000000e+00 : f32
      %66 = vector.broadcast %cst_32 : f32 to vector<8x128xf32>
      %67 = arith.subf %66, %65 : vector<8x128xf32>
      %68 = arith.mulf %64, %67 : vector<8x128xf32>
      %69 = arith.mulf %50, %68 : vector<8x128xf32>
      %70 = arith.mulf %18, %18 : vector<8x1xf32>
      %71 = vector.broadcast %18 : vector<8x1xf32> to vector<8x128xf32>
      %72 = vector.broadcast %20 : vector<1x128xf32> to vector<8x128xf32>
      %73 = arith.mulf %71, %72 : vector<8x128xf32>
      %74 = vector.broadcast %70 : vector<8x1xf32> to vector<8x128xf32>
      %75 = arith.addf %74, %73 : vector<8x128xf32>
      %cst_33 = arith.constant 9.99999993E-9 : f32
      %76 = vector.broadcast %cst_33 : f32 to vector<8x128xf32>
      %77 = arith.addf %75, %76 : vector<8x128xf32>
      %78 = vector.broadcast %14 : vector<8x1xf32> to vector<8x128xf32>
      %79 = vector.broadcast %16 : vector<1x128xf32> to vector<8x128xf32>
      %80 = arith.subf %78, %79 : vector<8x128xf32>
      %81 = math.rsqrt %77 : vector<8x128xf32>
      %82 = arith.mulf %80, %81 : vector<8x128xf32>
      %cst_34 = arith.constant -4.000000e+00 : f32
      %cst_35 = arith.constant 4.000000e+00 : f32
      %83 = vector.broadcast %cst_34 : f32 to vector<8x128xf32>
      %84 = arith.maximumf %83, %82 : vector<8x128xf32>
      %85 = vector.broadcast %cst_35 : f32 to vector<8x128xf32>
      %86 = arith.minimumf %85, %84 : vector<8x128xf32>
      %87 = arith.mulf %86, %86 : vector<8x128xf32>
      %cst_36 = arith.constant -2.72614237E-10 : f32
      %88 = vector.broadcast %cst_36 : f32 to vector<8x128xf32>
      %89 = arith.mulf %88, %87 : vector<8x128xf32>
      %cst_37 = arith.constant 2.77068146E-8 : f32
      %90 = vector.broadcast %cst_37 : f32 to vector<8x128xf32>
      %91 = arith.addf %89, %90 : vector<8x128xf32>
      %92 = arith.mulf %91, %87 : vector<8x128xf32>
      %cst_38 = arith.constant -2.10102394E-6 : f32
      %93 = vector.broadcast %cst_38 : f32 to vector<8x128xf32>
      %94 = arith.addf %92, %93 : vector<8x128xf32>
      %95 = arith.mulf %94, %87 : vector<8x128xf32>
      %cst_39 = arith.constant -5.69250624E-5 : f32
      %96 = vector.broadcast %cst_39 : f32 to vector<8x128xf32>
      %97 = arith.addf %95, %96 : vector<8x128xf32>
      %98 = arith.mulf %97, %87 : vector<8x128xf32>
      %cst_40 = arith.constant -7.34990637E-4 : f32
      %99 = vector.broadcast %cst_40 : f32 to vector<8x128xf32>
      %100 = arith.addf %98, %99 : vector<8x128xf32>
      %101 = arith.mulf %100, %87 : vector<8x128xf32>
      %cst_41 = arith.constant -2.954600e-03 : f32
      %102 = vector.broadcast %cst_41 : f32 to vector<8x128xf32>
      %103 = arith.addf %101, %102 : vector<8x128xf32>
      %104 = arith.mulf %103, %87 : vector<8x128xf32>
      %cst_42 = arith.constant -0.0160960332 : f32
      %105 = vector.broadcast %cst_42 : f32 to vector<8x128xf32>
      %106 = arith.addf %104, %105 : vector<8x128xf32>
      %107 = arith.mulf %106, %86 : vector<8x128xf32>
      %cst_43 = arith.constant -1.45660715E-5 : f32
      %108 = vector.broadcast %cst_43 : f32 to vector<8x128xf32>
      %109 = arith.mulf %108, %87 : vector<8x128xf32>
      %cst_44 = arith.constant -2.13374049E-4 : f32
      %110 = vector.broadcast %cst_44 : f32 to vector<8x128xf32>
      %111 = arith.addf %109, %110 : vector<8x128xf32>
      %112 = arith.mulf %111, %87 : vector<8x128xf32>
      %cst_45 = arith.constant -0.00168282702 : f32
      %113 = vector.broadcast %cst_45 : f32 to vector<8x128xf32>
      %114 = arith.addf %112, %113 : vector<8x128xf32>
      %115 = arith.mulf %114, %87 : vector<8x128xf32>
      %cst_46 = arith.constant -0.00737332925 : f32
      %116 = vector.broadcast %cst_46 : f32 to vector<8x128xf32>
      %117 = arith.addf %115, %116 : vector<8x128xf32>
      %118 = arith.mulf %117, %87 : vector<8x128xf32>
      %cst_47 = arith.constant -0.0142647391 : f32
      %119 = vector.broadcast %cst_47 : f32 to vector<8x128xf32>
      %120 = arith.addf %118, %119 : vector<8x128xf32>
      %121 = tpu.reciprocal %120 {approx = true} : vector<8x128xf32> -> vector<8x128xf32>
      %122 = arith.mulf %120, %121 : vector<8x128xf32>
      %cst_48 = arith.constant 2.000000e+00 : f32
      %123 = vector.broadcast %cst_48 : f32 to vector<8x128xf32>
      %124 = arith.subf %123, %122 : vector<8x128xf32>
      %125 = arith.mulf %121, %124 : vector<8x128xf32>
      %126 = arith.mulf %107, %125 : vector<8x128xf32>
      %cst_49 = arith.constant 1.000000e+00 : f32
      %127 = vector.broadcast %cst_49 : f32 to vector<8x128xf32>
      %128 = arith.addf %127, %69 : vector<8x128xf32>
      %cst_50 = arith.constant 1.000000e+00 : f32
      %129 = vector.broadcast %cst_50 : f32 to vector<8x128xf32>
      %130 = arith.addf %129, %126 : vector<8x128xf32>
      %131 = arith.mulf %128, %130 : vector<8x128xf32>
      %cst_51 = arith.constant 4.000000e-08 : f32
      %132 = vector.broadcast %cst_51 : f32 to vector<8x128xf32>
      %133 = arith.addf %131, %132 : vector<8x128xf32>
      %134 = math.sqrt %133 : vector<8x128xf32>
      %cst_52 = arith.constant 1.000000e+00 : f32
      %135 = vector.broadcast %cst_52 : f32 to vector<8x128xf32>
      %136 = arith.subf %135, %69 : vector<8x128xf32>
      %cst_53 = arith.constant 1.000000e+00 : f32
      %137 = vector.broadcast %cst_53 : f32 to vector<8x128xf32>
      %138 = arith.subf %137, %126 : vector<8x128xf32>
      %139 = arith.mulf %136, %138 : vector<8x128xf32>
      %cst_54 = arith.constant 4.000000e-08 : f32
      %140 = vector.broadcast %cst_54 : f32 to vector<8x128xf32>
      %141 = arith.addf %139, %140 : vector<8x128xf32>
      %142 = math.sqrt %141 : vector<8x128xf32>
      %143 = arith.addf %134, %142 : vector<8x128xf32>
      %cst_55 = arith.constant 5.000000e-01 : f32
      %144 = vector.broadcast %cst_55 : f32 to vector<8x128xf32>
      %145 = arith.mulf %144, %143 : vector<8x128xf32>
      %cst_56 = arith.constant 1.000000e+00 : f32
      %146 = vector.broadcast %cst_56 : f32 to vector<8x128xf32>
      %147 = arith.subf %146, %145 : vector<8x128xf32>
      %c0_57 = arith.constant 0 : index
      %c0_58 = arith.constant 0 : index
      %c0_59 = arith.constant 0 : index
      %148 = vector.load %arg9[%c0_57, %c0_58, %c0_59] : memref<1x8x128xf32, #tpu.memory_space<vmem>>, vector<1x8x128xf32>
      %149 = vector.shape_cast %148 : vector<1x8x128xf32> to vector<8x128xf32>
      %150 = vector.shape_cast %147 : vector<8x128xf32> to vector<1x8x128xf32>
      tpu.vector_store %arg9[%c0_57, %c0_58, %c0_59], %150 {strides = array<i32>} : memref<1x8x128xf32, #tpu.memory_space<vmem>>, vector<1x8x128xf32>,
    } else {
    }
    %7 = arith.extui %3 : i1 to i32
    %c0_i32_0 = arith.constant 0 : i32
    %8 = arith.cmpi ne, %7, %c0_i32_0 : i32
    scf.if %8 {
      %cst = arith.constant 0.000000e+00 : f32
      %9 = vector.broadcast %cst : f32 to vector<1x8x128xf32>
      %c0 = arith.constant 0 : index
      %c0_1 = arith.constant 0 : index
      %c0_2 = arith.constant 0 : index
      %10 = vector.load %arg9[%c0, %c0_1, %c0_2] : memref<1x8x128xf32, #tpu.memory_space<vmem>>, vector<1x8x128xf32>
      tpu.vector_store %arg9[%c0, %c0_1, %c0_2], %9 {strides = array<i32>} : memref<1x8x128xf32, #tpu.memory_space<vmem>>, vector<1x8x128xf32>,
    } else {
    }
    return
  }
  func.func @transform_0(%arg0: i32, %arg1: i32, %arg2: i32) -> (i32, i32, i32) {
    %c0_i32 = arith.constant 0 : i32
    %c0_i32_0 = arith.constant 0 : i32
    return %arg0, %arg1, %c0_i32 : i32, i32, i32
  }
  func.func @transform_1(%arg0: i32, %arg1: i32, %arg2: i32) -> (i32, i32, i32) {
    %c0_i32 = arith.constant 0 : i32
    %c0_i32_0 = arith.constant 0 : i32
    return %arg0, %c0_i32, %arg2 : i32, i32, i32
  }
  func.func @transform_2(%arg0: i32, %arg1: i32, %arg2: i32) -> (i32, i32, i32) {
    %c0_i32 = arith.constant 0 : i32
    %c0_i32_0 = arith.constant 0 : i32
    return %arg0, %arg1, %c0_i32 : i32, i32, i32
  }
  func.func @transform_3(%arg0: i32, %arg1: i32, %arg2: i32) -> (i32, i32, i32) {
    %c0_i32 = arith.constant 0 : i32
    %c0_i32_0 = arith.constant 0 : i32
    return %arg0, %c0_i32, %arg2 : i32, i32, i32
  }
  func.func @transform_4(%arg0: i32, %arg1: i32, %arg2: i32) -> (i32, i32, i32) {
    %c0_i32 = arith.constant 0 : i32
    %c0_i32_0 = arith.constant 0 : i32
    return %arg0, %arg1, %c0_i32 : i32, i32, i32
  }
  func.func @transform_5(%arg0: i32, %arg1: i32, %arg2: i32) -> (i32, i32, i32) {
    %c0_i32 = arith.constant 0 : i32
    %c0_i32_0 = arith.constant 0 : i32
    return %arg0, %c0_i32, %arg2 : i32, i32, i32
  }
  func.func @transform_6(%arg0: i32, %arg1: i32, %arg2: i32) -> (i32, i32, i32) {
    %c0_i32 = arith.constant 0 : i32
    return %arg0, %arg1, %arg2 : i32, i32, i32
  }
}

</mosaic_0001>

<bundles_post_ra>
// kernel: tpu_custom_call.1
= control target key start
LH: loop header
LB: loop body
LE: loop exit
PB: predicated region body
PF: predicated region fallthrough
CT: control target
= control target key end

     0   :  { %v230_v2 = vmov 0   ;;  %s297_s0 = inlined_call_operand.vmem [shape: f32[1,8,1], index: 0, kind: input, shape index: {}]   ;;  %s298_s1 = inlined_call_operand.vmem [shape: f32[1,1,128], index: 1, kind: input, shape index: {}]   ;;  %s299_s2 = inlined_call_operand.vmem [shape: f32[1,8,1], index: 2, kind: input, shape index: {}]   ;;  %s300_s3 = inlined_call_operand.vmem [shape: f32[1,1,128], index: 3, kind: input, shape index: {}]   ;;  %s301_s4 = inlined_call_operand.vmem [shape: f32[1,8,1], index: 4, kind: input, shape index: {}]   ;;  %s302_s5 = inlined_call_operand.vmem [shape: f32[1,1,128], index: 5, kind: input, shape index: {}]   ;;  %s303_s6 = inlined_call_operand.hbm [shape: f32[1,8,128], index: 6, kind: output, shape index: {}]  }
   0x1   :  { %v36_v0 = vld [vmem:[%s301_s4] sm:$0xff]  ;;  %195 = vset.pattern.permute.xlu1 %v230_v2  ;;  %194 = vset.pattern.permute.xlu0 %v230_v2 }
   0x2   :  { %v32_v1 = vld [vmem:[%s297_s0] sm:$0xff] }
   0x3   :  { %11 = vsyncpa [#allocation3], 0  ;;  %83 = vperm.xlu0 %194, %v36_v0   ;;  %v80_v3 = vmul.f32 %v36_v0, %v36_v0  ;;  %40 = vperm.xlu1 %195, %v32_v1   ;;  %v34_v4 = vld [vmem:[%s299_s2] sm:$0xff]  ;;  %s231_s2 = smov [#allocation2]  }
   0x4   :  { %v187_v5 = vld [vmem:[%s298_s1] ss:$0 sm:$0xff] }
   0x5   :  { %v189_v6 = vld [vmem:[%s302_s5] ss:$0 sm:$0xff] }
   0x6   :  { %v190_v24 = vld [vmem:[%s300_s3] ss:$0 sm:$0xff]  ;;  %s179_s3 = sshll.u32 %s231_s2, 4  ;;  %s180_s3 = int_to_ptr.vmem [resolvable:$true] %s179_s3 }
   0x7   :  { %95 = vperm.xlu0 %194, %v80_v3   ;;  %102 = vperm.xlu1 %195, %v34_v4   ;;  %s206_s5 = scalar_lea.vmem %s180_s3, 128  ;;  %p211_p1 = scmp.lt.s32.totalorder %s180_s3, %s180_s3 }
   0x8   :  { %p207_p0 = scmp.ne.s32.totalorder %s180_s3, %s206_s5  ;;  %p212_p2 = scmp.lt.s32.totalorder %s206_s5, %s206_s5 }
   0xa   :  { %p213_p3 = por %p212_p2, %p211_p1 }
   0xc   :  { %p214_p4 = pnand %p213_p3, %p207_p0 }
  0x82   :  { %v84_v7 = vpop.permute.xlu0 %83  ;;  %v41_v8 = vpop.permute.xlu1 %40 }
  0x83   :  { %v49_v9 = vsub.f32 %v41_v8, %v187_v5  ;;  %v92_v10 = vmul.f32 %v189_v6, %v84_v7 }
  0x85   :  { %v50_v11 = vmul.f32 0.70710677, %v49_v9 }
  0x86   :  { %v96_v12 = vpop.permute.xlu0 %95  ;;  %v103_v25 = vpop.permute.xlu1 %102 }
  0x87   :  { %v188_v13 = vclamps-f32 %v50_v11, 4.0  ;;  %v98_v14 = vadd.f32 %v96_v12, %v92_v10  ;;  %v111_v27 = vsub.f32 %v103_v25, %v190_v24 }
  0x89   :  { %v53_v15 = vmul.f32 %v188_v13, %v188_v13  ;;  %v99_v16 = vadd.f32 1e-08, %v98_v14 }
  0x8b   :  { %v54_v17 = vmul.f32 -2.7261424e-10, %v53_v15  ;;  %v67_v18 = vmul.f32 -1.45660715e-05, %v53_v15  ;;  %196 = vrsqrt.f32 %v99_v16 }
  0x8d   :  { %v55_v19 = vadd.f32 2.7706815e-08, %v54_v17  ;;  %v68_v20 = vadd.f32 -0.00021337405, %v67_v18 }
  0x8f   :  { %v69_v21 = vmul.f32 %v68_v20, %v53_v15  ;;  %v56_v22 = vmul.f32 %v55_v19, %v53_v15 }
  0x91   :  { %v70_v23 = vadd.f32 -0.001682827, %v69_v21  ;;  %v57_v29 = vadd.f32 -2.101024e-06, %v56_v22 }
  0x93   :  { %v71_v26 = vmul.f32 %v70_v23, %v53_v15  ;;  %v58_v33 = vmul.f32 %v57_v29, %v53_v15 }
  0x95   :  { %v197_v28 = vpop.eup %196  ;;  %v72_v30 = vadd.f32 -0.0073733293, %v71_v26  ;;  %v59_v38 = vadd.f32 -5.6925062e-05, %v58_v33 }
  0x96   :  { %v113_v31 = vmul.f32 %v197_v28, %v111_v27 }
  0x97   :  { %v73_v34 = vmul.f32 %v72_v30, %v53_v15  ;;  %v60_v44 = vmul.f32 %v59_v38, %v53_v15 }
  0x98   :  { %v191_v32 = vclamps-f32 %v113_v31, 4.0 }
  0x99   :  { %v74_v39 = vadd.f32 -0.014264739, %v73_v34  ;;  %v61_v49 = vadd.f32 -0.00073499064, %v60_v44 }
  0x9a   :  { %v116_v35 = vmul.f32 %v191_v32, %v191_v32 }
  0x9b   :  { %198 = vrcp.f32 %v74_v39  ;;  %v62_v54 = vmul.f32 %v61_v49, %v53_v15 }
  0x9c   :  { %v117_v36 = vmul.f32 -2.7261424e-10, %v116_v35  ;;  %v130_v37 = vmul.f32 -1.45660715e-05, %v116_v35 }
  0x9d   :  { %v63_v59 = vadd.f32 -0.0029546, %v62_v54 }
  0x9e   :  { %v118_v40 = vadd.f32 2.7706815e-08, %v117_v36  ;;  %v131_v41 = vadd.f32 -0.00021337405, %v130_v37 }
  0x9f   :  { %v64_v62 = vmul.f32 %v63_v59, %v53_v15 }
  0xa0   :  { %v119_v42 = vmul.f32 %v118_v40, %v116_v35  ;;  %v132_v43 = vmul.f32 %v131_v41, %v116_v35 }
  0xa1   :  { %v65_v1 = vadd.f32 -0.016096033, %v64_v62 }
  0xa2   :  { %v120_v45 = vadd.f32 -2.101024e-06, %v119_v42  ;;  %v133_v46 = vadd.f32 -0.001682827, %v132_v43 }
  0xa3   :  { %v66_v6 = vmul.f32 %v188_v13, %v65_v1 }
  0xa4   :  { %v121_v47 = vmul.f32 %v120_v45, %v116_v35  ;;  %v134_v48 = vmul.f32 %v133_v46, %v116_v35 }
  0xa5   :  { %v199_v57 = vpop.eup %198 }
  0xa6   :  { %v122_v50 = vadd.f32 -5.6925062e-05, %v121_v47  ;;  %v135_v51 = vadd.f32 -0.0073733293, %v134_v48  ;;  %v76_v60 = vmul.f32 %v199_v57, %v74_v39 }
  0xa8   :  { %v123_v52 = vmul.f32 %v122_v50, %v116_v35  ;;  %v136_v53 = vmul.f32 %v135_v51, %v116_v35  ;;  %v77_v63 = vsub.f32 2.0, %v76_v60 }
  0xaa   :  { %v124_v55 = vadd.f32 -0.00073499064, %v123_v52  ;;  %v137_v56 = vadd.f32 -0.014264739, %v136_v53  ;;  %v78_v3 = vmul.f32 %v199_v57, %v77_v63 }
  0xac   :  { %v125_v58 = vmul.f32 %v124_v55, %v116_v35  ;;  %200 = vrcp.f32 %v137_v56  ;;  %v79_v8 = vmul.f32 %v78_v3, %v66_v6 }
  0xae   :  { %v126_v61 = vadd.f32 -0.0029546, %v125_v58  ;;  %v143_v12 = vadd.f32 1.0, %v79_v8  ;;  %v154_v14 = vsub.f32 1.0, %v79_v8 }
  0xb0   :  { %v127_v0 = vmul.f32 %v126_v61, %v116_v35 }
  0xb2   :  { %v128_v4 = vadd.f32 -0.016096033, %v127_v0 }
  0xb4   :  { %v129_v9 = vmul.f32 %v191_v32, %v128_v4 }
  0xb6   :  { %v201_v2 = vpop.eup %200 }
  0xb7   :  { %v139_v5 = vmul.f32 %v201_v2, %v137_v56 }
  0xb9   :  { %v140_v7 = vsub.f32 2.0, %v139_v5 }
  0xbb   :  { %v141_v10 = vmul.f32 %v201_v2, %v140_v7 }
  0xbd   :  { %v142_v11 = vmul.f32 %v141_v10, %v129_v9 }
  0xbf   :  { %v144_v16 = vadd.f32 1.0, %v142_v11  ;;  %v155_v17 = vsub.f32 1.0, %v142_v11 }
  0xc1   :  { %v145_v18 = vmul.f32 %v144_v16, %v143_v12  ;;  %v156_v19 = vmul.f32 %v155_v17, %v154_v14 }
  0xc3   :  { %v146_v15 = vadd.f32 4e-08, %v145_v18  ;;  %v157_v20 = vadd.f32 4e-08, %v156_v19 }
  0xc5   :  { %202 = vrsqrt.f32 %v146_v15  ;;  %vm149_vm0 = vcmp.eq.f32.partialorder %v146_v15, inf  ;;  %v152_v13 = vand.u32 2147483648, %v146_v15  ;;  %vm151_vm1 = vcmp.eq.f32.partialorder %v146_v15, 0.0 }
  0xc6   :  { %204 = vrsqrt.f32 %v157_v20  ;;  %vm160_vm2 = vcmp.eq.f32.partialorder %v157_v20, inf  ;;  %v163_v26 = vand.u32 2147483648, %v157_v20  ;;  %vm162_vm3 = vcmp.eq.f32.partialorder %v157_v20, 0.0 }
  0xcf   :  { %v203_v21 = vpop.eup %202 }
  0xd0   :  { %v205_v22 = vpop.eup %204  ;;  %v148_v23 = vmul.f32 %v203_v21, %v146_v15 }
  0xd1   :  { %v159_v24 = vmul.f32 %v205_v22, %v157_v20 }
  0xd2   :  { %v150_v25 = vsel %vm149_vm0, %v146_v15, %v148_v23 }
  0xd3   :  { %v153_v27 = vsel %vm151_vm1, %v152_v13, %v150_v25  ;;  %v161_v28 = vsel %vm160_vm2, %v157_v20, %v159_v24 }
  0xd4   :  { %v164_v29 = vsel %vm162_vm3, %v163_v26, %v161_v28 }
  0xd5   :  { %v165_v30 = vadd.f32 %v164_v29, %v153_v27 }
  0xd7   :  { %v166_v31 = vmul.f32 0.5, %v165_v30 }
  0xd9   :  { %v167_v32 = vsub.f32 1.0, %v166_v31 }
  0xdb   :  { %168 = vst [vmem:[#allocation2] sm:$0xff] %v167_v32 }
  0xdc   :  { %217 = shalt.err (!%p214_p4)
}
  0xdd   :  { %s218_s8 = scalar_lea.hbm %s303_s6, 128 }
  0xde   :  { %p219_p5 = scmp.ne.s32.totalorder %s303_s6, %s218_s8  ;;  %p222_p6 = scmp.lt.u32.totalorder %s218_s8, %s303_s6 }
  0xe0   :  { %p224_p7 = pnand %p222_p6, %p219_p5 }
  0xe2   :  { %227 = shalt.err (!%p224_p7)
}
  0xe3   :  { %182 = dma.vmem_to_hbm [thread:$0]  %s180_s3, 128, %s303_s6, [#allocation3]  }
  0xe4   :  { %228 = dma.done.wait [#allocation3], 128  }
  0xe5   :  { %229 = vsyncadd [#allocation3], 4294967168 }
  0xe6   :  { %186 = vsyncpa [#allocation3], 1 }

</bundles_post_ra>
